<compile_context>
chip_gen: v6e
topology: v6e:2x2x1
jax: 0.10.0
libtpu: 0.0.40
codegen_flags: <defaults>
</compile_context>

<pallas_src>
import jax
import jax.numpy as jnp
from jax import lax
from jax.experimental import pallas as pl
from jax.experimental.pallas import tpu as pltpu

_LANES = 128


def _cdiv(a, b):
    return (a + b - 1) // b


def _physical_vmem_bytes():
    """Best-effort physical VMEM per TensorCore; conservative (64 MiB) fallback."""
    try:
        v = int(pltpu.get_tpu_info().vmem_capacity_bytes)
        if v > 0:
            return v
    except Exception:
        pass
    try:
        kind = jax.devices()[0].device_kind.lower()
        if "v5" in kind or "v6" in kind:
            return 128 << 20
    except Exception:
        pass
    return 64 << 20  # unknown / v7x-safe default


def _make_kernel(*, num_k, num_n, tn, tail, num_c):
    """Build the accumulation kernel with all tiling parameters baked in statically."""
    n_groups = tn // _LANES           # full 128-lane groups in a full feature tile
    tail_groups = tail // _LANES      # full groups in the (possibly partial) last tile
    tail_rem = tail % _LANES          # valid lanes in the boundary group of the last tile
    tail_partial = tail < tn          # does the last feature tile need masking?
    has_skip = (num_c * num_k) > num_n  # core-split with odd num_n -> one wasted step

    def accum(x_ref, o_ref, groups, rem):
        # Sum `groups` full 128-lane groups (plus an optional `rem`-lane masked
        # group) into the lane-dense f32 accumulator o_ref[0]  (shape (tb, 128)).
        if groups > 0:
            if groups <= 32:
                for g in range(groups):          # static unroll for small tiles
                    o_ref[0] += x_ref[:, g * _LANES:(g + 1) * _LANES].astype(jnp.float32)
            else:
                def body(g, carry):
                    i = pl.multiple_of(g * _LANES, _LANES)
                    o_ref[0] += x_ref[:, pl.ds(i, _LANES)].astype(jnp.float32)
                    return carry
                lax.fori_loop(0, groups, body, 0, unroll=8)
        if rem:
            i0 = groups * _LANES
            v = x_ref[:, i0:i0 + _LANES].astype(jnp.float32)
            lane = lax.broadcasted_iota(jnp.int32, v.shape, 1)
            o_ref[0] += jnp.where(lane < rem, v, 0.0)  # zero out-of-bounds garbage

    def kernel(x_ref, o_ref):
        c = pl.program_id(0)              # core-split axis ("parallel")
        k = pl.program_id(2)              # reduction axis ("arbitrary", innermost)
        kk = c * num_k + k                # global feature-tile index

        @pl.when(k == 0)
        def _init():
            o_ref[...] = jnp.zeros_like(o_ref)

        if tail_partial:
            @pl.when(kk < num_n - 1)
            def _full():
                accum(x_ref, o_ref, n_groups, 0)

            @pl.when(kk == num_n - 1)
            def _tail():
                accum(x_ref, o_ref, tail_groups, tail_rem)
            # kk > num_n - 1 (clamped duplicate step of core 1): accumulate nothing.
        else:
            if has_skip:
                @pl.when(kk < num_n)
                def _full():
                    accum(x_ref, o_ref, n_groups, 0)
            else:
                accum(x_ref, o_ref, n_groups, 0)

    return kernel


def global_avg_pool(x, keepdim=True, *, block_bytes=None):
    """GlobalAvgPool.forward: x.flatten(start_dim=1).mean(dim=1, keepdim=keepdim)."""
    B = x.shape[0]
    n_total = 1
    for d in x.shape[1:]:
        n_total *= int(d)

    dtype = x.dtype
    itemsize = jnp.dtype(dtype).itemsize
    sublanes = max(8, 32 // itemsize)        # f32: 8, bf16: 16, int8/fp8: 32

    # ---- small-batch packing: fold r feature chunks into extra rows so the
    #      sublanes of every vreg / DMA row carry real data.
    r = 1
    if B < sublanes and n_total > 1:
        r = max(1, sublanes // B)
        while r > 1 and n_total % r != 0:
            r -= 1
    rows = B * r
    n_per_row = n_total // r

    x2 = x.reshape(rows, n_per_row)          # pure flatten: no data movement

    # Degenerate tiny feature dim only: one-off 128-lane pad (negligible bytes).
    if n_per_row < _LANES:
        x2 = jnp.pad(x2, ((0, 0), (0, _LANES - n_per_row)))
        n_cols = _LANES
    else:
        n_cols = n_per_row

    # ---- row tiling: one tile up to 512 rows (block dim == full array dim is
    #      always legal), else 256-row tiles with a partial boundary tile.
    tb = rows if rows <= 512 else 256
    num_b = _cdiv(rows, tb)

    # ---- feature tiling: big blocks to amortize the ~0.35us per-step overhead.
    phys_vmem = _physical_vmem_bytes()
    if block_bytes is None:
        block_bytes = (16 << 20) if phys_vmem <= (64 << 20) else (8 << 20)
    budget_tn = (block_bytes // (tb * itemsize)) // _LANES * _LANES
    tn_fit = (n_cols // _LANES) * _LANES     # keep the first blocks fully in-bounds
    tn = max(_LANES, min(budget_tn, tn_fit))
    num_n = _cdiv(n_cols, tn)
    tail = n_cols - (num_n - 1) * tn         # valid columns in the last feature tile

    # ---- core split: when the row axis can't parallelize, split the feature
    #      tiles over a leading size-2 "parallel" axis (uses both v7x TCs).
    num_c = 2 if (num_b == 1 and num_n >= 4) else 1
    num_k = _cdiv(num_n, num_c)
    has_skip = num_c * num_k > num_n

    if num_c == 1:
        in_map = lambda c, i, k: (i, k)
    elif not has_skip:
        in_map = lambda c, i, k: (i, c * num_k + k)
    else:
        # Clamp the one overshooting step of core 1; the kernel skips its accumulation.
        in_map = lambda c, i, k: (i, jnp.minimum(c * num_k + k, num_n - 1))

    kernel = _make_kernel(num_k=num_k, num_n=num_n, tn=tn, tail=tail, num_c=num_c)

    in_block = tb * tn * itemsize
    out_block = tb * _LANES * 4
    vmem_limit = 2 * in_block + 2 * out_block + (4 << 20)
    vmem_limit = int(min(max(vmem_limit, 32 << 20), phys_vmem * 3 // 4))

    acc = pl.pallas_call(
        kernel,
        out_shape=jax.ShapeDtypeStruct((num_c, rows, _LANES), jnp.float32),
        grid_spec=pltpu.PrefetchScalarGridSpec(
            num_scalar_prefetch=0,
            grid=(num_c, num_b, num_k),                      # reduction axis last
            in_specs=[pl.BlockSpec((tb, tn), in_map)],
            out_specs=pl.BlockSpec((1, tb, _LANES), lambda c, i, k: (c, i, 0)),
        ),
        compiler_params=pltpu.CompilerParams(
            dimension_semantics=("parallel", "parallel", "arbitrary"),
            vmem_limit_bytes=vmem_limit,
        ),
    )(x2)

    # ---- tiny epilogue in plain JAX: lane reduce, core reduce, unpack, scale, cast.
    sums = acc.sum(axis=(0, 2))              # (rows,) f32
    if r > 1:
        sums = sums.reshape(B, r).sum(axis=1)
    mean = (sums * jnp.float32(1.0 / n_total)).astype(dtype)
    if keepdim:
        return mean.reshape(B, 1)
    return mean


if __name__ == "__main__":
    key = jax.random.PRNGKey(0)

    def _ref(x, keepdim=True):
        m = x.astype(jnp.float32).reshape(x.shape[0], -1).mean(axis=1, keepdims=True)
        m = m.astype(x.dtype)
        return m if keepdim else m.reshape(-1)

    k1, k2, k3, k4 = jax.random.split(key, 4)

    # 1) Module's nominal small case: B=2, C=4, H=16, W=16, f32.
    x1 = jax.random.normal(k1, (2, 4, 16, 16), dtype=jnp.float32)
    y1 = jax.block_until_ready(global_avg_pool(x1, keepdim=True))
    assert y1.shape == (2, 1), y1.shape
    assert jnp.allclose(y1, _ref(x1), atol=1e-5, rtol=1e-5)

    # keepdim=False path.
    y1f = jax.block_until_ready(global_avg_pool(x1, keepdim=False))
    assert y1f.shape == (2,), y1f.shape
    assert jnp.allclose(y1f, _ref(x1, keepdim=False), atol=1e-5, rtol=1e-5)

    # 2) Tiny, non-aligned shape (n_per_row < 128 -> one-off lane-pad path).
    x2 = jax.random.normal(k2, (3, 1, 7, 11), dtype=jnp.float32)
    y2 = jax.block_until_ready(global_avg_pool(x2))
    assert jnp.allclose(y2, _ref(x2), atol=1e-5, rtol=1e-5)

    # 3) Multi-tile reduction + even core-split (num_b==1, num_n=8), forced small blocks.
    x3 = jax.random.normal(k3, (200, 4, 16, 16), dtype=jnp.float32)
    y3 = jax.block_until_ready(global_avg_pool(x3, block_bytes=64 * 1024))
    assert jnp.allclose(y3, _ref(x3), atol=1e-5, rtol=1e-5)

    # 4) Odd core-split (num_n=5) with one clamped/skipped step + masked feature tail.
    x4 = jax.random.normal(k4, (16, 6, 10, 10), dtype=jnp.float32)
    y4 = jax.block_until_ready(global_avg_pool(x4, block_bytes=8 * 1024))
    assert jnp.allclose(y4, _ref(x4), atol=1e-5, rtol=1e-5)

    # 5) Non-8-multiple row tile (tb=9) + masked tail, no core split.
    x5 = jax.random.normal(k2, (9, 4, 13, 13), dtype=jnp.float32)
    y5 = jax.block_until_ready(global_avg_pool(x5))
    assert jnp.allclose(y5, _ref(x5), atol=1e-5, rtol=1e-5)

    # 6) bf16 input (small-batch sublane packing with r=8 for B=2).
    x6 = jax.random.normal(k1, (2, 4, 16, 16), dtype=jnp.bfloat16)
    y6 = jax.block_until_ready(global_avg_pool(x6))
    assert y6.dtype == jnp.bfloat16 and y6.shape == (2, 1)
    assert jnp.allclose(y6.astype(jnp.float32), _ref(x6).astype(jnp.float32),
                        atol=1e-2, rtol=1e-2)

    print("KERNEL_OK")
</pallas_src>

<mosaic_0001>
module attributes {stable_mosaic.version = 11 : i64} {
  func.func @kernel(%arg0: i32, %arg1: i32, %arg2: i32, %arg3: memref<8x256xf32, #tpu.memory_space<vmem>>, %arg4: memref<1x8x128xf32, #tpu.memory_space<vmem>>) attributes {dimension_semantics = [#tpu.dimension_semantics<parallel>, #tpu.dimension_semantics<parallel>, #tpu.dimension_semantics<arbitrary>], iteration_bounds = array<i64: 1, 1, 1>, scalar_prefetch = 0 : i64, scratch_operands = 0 : i64, tpu.core_type = #tpu.core_type<tc>, window_params = [{transform_indices = @transform_0, window_bounds = array<i64: 8, 256>}, {transform_indices = @transform_1, window_bounds = array<i64: 1, 8, 128>}]} {
    %c0_i32 = arith.constant 0 : i32
    %0 = arith.cmpi eq, %arg2, %c0_i32 : i32
    %1 = arith.extui %0 : i1 to i32
    %c0_i32_0 = arith.constant 0 : i32
    %2 = arith.cmpi ne, %1, %c0_i32_0 : i32
    scf.if %2 {
      %cst = arith.constant 0.000000e+00 : f32
      %17 = vector.broadcast %cst : f32 to vector<1x8x128xf32>
      %c0_15 = arith.constant 0 : index
      %c0_16 = arith.constant 0 : index
      %c0_17 = arith.constant 0 : index
      %18 = vector.load %arg4[%c0_15, %c0_16, %c0_17] : memref<1x8x128xf32, #tpu.memory_space<vmem>>, vector<1x8x128xf32>
      tpu.vector_store %arg4[%c0_15, %c0_16, %c0_17], %17 {strides = array<i32>} : memref<1x8x128xf32, #tpu.memory_space<vmem>>, vector<1x8x128xf32>,
    } else {
    }
    %c0 = arith.constant 0 : index
    %c0_1 = arith.constant 0 : index
    %c0_2 = arith.constant 0 : index
    %3 = vector.load %arg4[%c0, %c0_1, %c0_2] : memref<1x8x128xf32, #tpu.memory_space<vmem>>, vector<1x8x128xf32>
    %4 = vector.shape_cast %3 : vector<1x8x128xf32> to vector<8x128xf32>
    %c0_3 = arith.constant 0 : index
    %c0_4 = arith.constant 0 : index
    %5 = vector.load %arg3[%c0_3, %c0_4] : memref<8x256xf32, #tpu.memory_space<vmem>>, vector<8x128xf32>
    %6 = arith.addf %4, %5 : vector<8x128xf32>
    %c0_5 = arith.constant 0 : index
    %c0_6 = arith.constant 0 : index
    %c0_7 = arith.constant 0 : index
    %7 = vector.load %arg4[%c0_5, %c0_6, %c0_7] : memref<1x8x128xf32, #tpu.memory_space<vmem>>, vector<1x8x128xf32>
    %8 = vector.shape_cast %7 : vector<1x8x128xf32> to vector<8x128xf32>
    %9 = vector.shape_cast %6 : vector<8x128xf32> to vector<1x8x128xf32>
    tpu.vector_store %arg4[%c0_5, %c0_6, %c0_7], %9 {strides = array<i32>} : memref<1x8x128xf32, #tpu.memory_space<vmem>>, vector<1x8x128xf32>,
    %c0_8 = arith.constant 0 : index
    %c0_9 = arith.constant 0 : index
    %c0_10 = arith.constant 0 : index
    %10 = vector.load %arg4[%c0_8, %c0_9, %c0_10] : memref<1x8x128xf32, #tpu.memory_space<vmem>>, vector<1x8x128xf32>
    %11 = vector.shape_cast %10 : vector<1x8x128xf32> to vector<8x128xf32>
    %c0_11 = arith.constant 0 : index
    %c128 = arith.constant 128 : index
    %12 = vector.load %arg3[%c0_11, %c128] : memref<8x256xf32, #tpu.memory_space<vmem>>, vector<8x128xf32>
    %13 = arith.addf %11, %12 : vector<8x128xf32>
    %c0_12 = arith.constant 0 : index
    %c0_13 = arith.constant 0 : index
    %c0_14 = arith.constant 0 : index
    %14 = vector.load %arg4[%c0_12, %c0_13, %c0_14] : memref<1x8x128xf32, #tpu.memory_space<vmem>>, vector<1x8x128xf32>
    %15 = vector.shape_cast %14 : vector<1x8x128xf32> to vector<8x128xf32>
    %16 = vector.shape_cast %13 : vector<8x128xf32> to vector<1x8x128xf32>
    tpu.vector_store %arg4[%c0_12, %c0_13, %c0_14], %16 {strides = array<i32>} : memref<1x8x128xf32, #tpu.memory_space<vmem>>, vector<1x8x128xf32>,
    return
  }
  func.func @transform_0(%arg0: i32, %arg1: i32, %arg2: i32) -> (i32, i32) {
    %c0_i32 = arith.constant 0 : i32
    return %arg1, %arg2 : i32, i32
  }
  func.func @transform_1(%arg0: i32, %arg1: i32, %arg2: i32) -> (i32, i32, i32) {
    %c0_i32 = arith.constant 0 : i32
    %c0_i32_0 = arith.constant 0 : i32
    return %arg0, %arg1, %c0_i32 : i32, i32, i32
  }
}

</mosaic_0001>

<bundles_post_ra>
// kernel: tpu_custom_call.1
= control target key start
LH: loop header
LB: loop body
LE: loop exit
PB: predicated region body
PF: predicated region fallthrough
CT: control target
= control target key end

     0   :  { %6 = vsyncpa [#allocation3], 0  ;;  %s114_s0 = inlined_call_operand.hbm [shape: f32[8,256], index: 0, kind: input, shape index: {}]   ;;  %s115_s1 = inlined_call_operand.hbm [shape: f32[1,8,128], index: 1, kind: output, shape index: {}]  }
   0x1   :  { %7 = vsyncpa [#allocation4], 0  ;;  %s96_s6 = smov [#allocation2]  }
   0x2   :  { %s14_s7 = sshll.u32 %s96_s6, 4  ;;  %s15_s7 = int_to_ptr.vmem [resolvable:$true] %s14_s7 }
   0x3   :  { %s60_s8 = scalar_lea.vmem %s15_s7, 256  ;;  %p65_p1 = scmp.lt.s32.totalorder %s15_s7, %s15_s7 }
   0x4   :  { %p61_p0 = scmp.ne.s32.totalorder %s15_s7, %s60_s8  ;;  %p66_p2 = scmp.lt.s32.totalorder %s60_s8, %s60_s8 }
   0x6   :  { %p67_p3 = por %p66_p2, %p65_p1 }
   0x8   :  { %p68_p4 = pnand %p67_p3, %p61_p0 }
   0xa   :  { %71 = shalt.err (!%p68_p4)
}
   0xb   :  { %17 = dma.hbm_to_vmem [thread:$0]  %s114_s0, 256, %s15_s7, [#allocation3]  }
   0xc   :  { %92 = dma.done.wait [#allocation3], 256  }
   0xd   :  { %93 = vsyncadd [#allocation3], 4294967040  ;;  %v27_v0 = vld [vmem:[#allocation2] sm:$0xff]  ;;  %v31_v1 = vld [vmem:[#allocation2 + $0x8] sm:$0xff]  ;;  %s97_s11 = smov [#allocation5]  }
   0xe   :  { %s40_s12 = sshll.u32 %s97_s11, 4  ;;  %v32_v2 = vadd.f32 %v31_v1, %v27_v0  ;;  %s41_s12 = int_to_ptr.vmem [resolvable:$true] %s40_s12 }
   0xf   :  { %s72_s13 = scalar_lea.vmem %s41_s12, 128  ;;  %p77_p6 = scmp.lt.s32.totalorder %s41_s12, %s41_s12 }
  0x10   :  { %33 = vst [vmem:[#allocation5] sm:$0xff] %v32_v2  ;;  %p73_p5 = scmp.ne.s32.totalorder %s41_s12, %s72_s13  ;;  %p78_p7 = scmp.lt.s32.totalorder %s72_s13, %s72_s13 }
  0x12   :  { %p79_p8 = por %p78_p7, %p77_p6 }
  0x14   :  { %p80_p9 = pnand %p79_p8, %p73_p5 }
  0x16   :  { %83 = shalt.err (!%p80_p9)
}
  0x17   :  { %43 = dma.vmem_to_hbm [thread:$0]  %s41_s12, 128, %s115_s1, [#allocation4]  }
  0x18   :  { %94 = dma.done.wait [#allocation4], 128  }
  0x19   :  { %95 = vsyncadd [#allocation4], 4294967168 }
  0x1a   :  { %47 = vsyncpa [#allocation3], 1 }
  0x1b   :  { %48 = vsyncpa [#allocation4], 1 }

</bundles_post_ra>
